<compile_context>
chip_gen: v5e
topology: v5e:2x2
jax: 0.10.0
libtpu: 0.0.40
codegen_flags: <defaults>
</compile_context>

<pallas_src>
import functools

import numpy as np
import jax
import jax.numpy as jnp
from jax.experimental import pallas as pl
from jax.experimental.pallas import tpu as pltpu

LANE = 128        # last-dim (lane) alignment
SUBLANE = 8       # second-to-last-dim (sublane) alignment
_MIN_SPLIT_ROWS = 128   # force a 2-step grid (megacore) only when padded B >= 2*this


def _round_up(n, m):
    return ((n + m - 1) // m) * m


def _cdiv(a, b):
    return (a + b - 1) // b


def _pad2d(a, rows, cols):
    pr, pc = rows - a.shape[0], cols - a.shape[1]
    if pr == 0 and pc == 0:
        return a
    return jnp.pad(a, ((0, pr), (0, pc)))


def _vmem_budget_bytes():
    """Generation-aware VMEM budget (v5e/v6e: 128 MiB physical, v7x: 64 MiB)."""
    cap = None
    try:
        info = pltpu.get_tpu_info()
        for name in ("vmem_capacity_bytes", "vmem_bytes", "vmem_size_bytes"):
            cap = getattr(info, name, None)
            if cap:
                break
    except Exception:
        cap = None
    if not cap:
        cap = 64 * 1024 * 1024          # conservative (v7x-sized) fallback
    budget = int(cap * 0.85)            # headroom for compiler scratch
    return max(32 * 1024 * 1024, min(budget, 112 * 1024 * 1024))


def feed_forward_kernel(x_ref, w1_ref, b1_ref, w2_ref, b2_ref, w3_ref, b3_ref,
                        o_ref):
    # x arrives as f32 (no extra wrapper-side cast pass over HBM); cast to the
    # weights' compute dtype (bf16) right before feeding the MXU.
    x = x_ref[...].astype(w1_ref.dtype)
    # Layer 1: Linear + ReLU  (bf16 operands -> MXU, f32 accumulation/epilogue)
    h = jnp.dot(x, w1_ref[...], preferred_element_type=jnp.float32)
    h = jnp.maximum(h + b1_ref[...], 0.0)            # b1 is (1, H), broadcasts
    # Layer 2: Linear + ReLU
    h = jnp.dot(h.astype(w2_ref.dtype), w2_ref[...],
                preferred_element_type=jnp.float32)
    h = jnp.maximum(h + b2_ref[...], 0.0)
    # Layer 3: Linear (no activation)
    h = jnp.dot(h.astype(w3_ref.dtype), w3_ref[...],
                preferred_element_type=jnp.float32)
    o_ref[...] = (h + b3_ref[...]).astype(o_ref.dtype)


def prepare_params(params, compute_dtype=jnp.bfloat16):
    """Pad feature dims to lane width and cast weights to the MXU compute dtype.

    Done ONCE at init (not per forward call) so repeated inference does not
    re-read, re-pad and re-cast the f32 weights from HBM on every step.
    Returns (padded_param_dict, logical_d_out).
    """
    d_in, h = params["w1"].shape
    d_out = params["w3"].shape[1]
    d_in_p, h_p, d_out_p = (_round_up(d, LANE) for d in (d_in, h, d_out))
    padded = {
        "w1": _pad2d(params["w1"], d_in_p, h_p).astype(compute_dtype),
        "b1": _pad2d(params["b1"], 1, h_p).astype(jnp.float32),
        "w2": _pad2d(params["w2"], h_p, h_p).astype(compute_dtype),
        "b2": _pad2d(params["b2"], 1, h_p).astype(jnp.float32),
        "w3": _pad2d(params["w3"], h_p, d_out_p).astype(compute_dtype),
        "b3": _pad2d(params["b3"], 1, d_out_p).astype(jnp.float32),
    }
    return padded, d_out


@functools.partial(
    jax.jit,
    static_argnames=("d_out", "tile_m", "out_dtype", "single_buffer_weights"))
def feed_forward_network(x, padded_params, *, d_out, tile_m=512,
                         out_dtype=jnp.float32, single_buffer_weights=True):
    """Fused FeedForwardNetwork forward pass.

    x: [B, D_in] float32
    padded_params: output of prepare_params() (lane-padded, bf16 weights)
    returns: [B, d_out] out_dtype
    """
    B = x.shape[0]
    d_in_p, h_p = padded_params["w1"].shape
    d_out_p = padded_params["w3"].shape[1]
    out_itemsize = np.dtype(out_dtype).itemsize

    budget = _vmem_budget_bytes()
    wbuf = 1 if single_buffer_weights else 2
    weight_bytes = wbuf * (
        2 * (d_in_p * h_p + h_p * h_p + h_p * d_out_p)    # bf16 weights
        + 4 * (2 * h_p + d_out_p))                        # f32 biases
    if weight_bytes > budget:
        # TODO(synk): add a hidden-dim-tiled fallback (grid axis over h_p chunks
        # with an f32 VMEM accumulator, 'arbitrary' semantics) for H too large
        # to keep fully resident on v7x's 64 MiB VMEM.
        raise ValueError(
            f"hidden size too large for resident-weight kernel "
            f"({weight_bytes} B of weights vs {budget} B VMEM budget)")

    # ---- batch tiling: minimal padding; >=2 grid steps for megacore when big --
    b_p8 = _round_up(B, SUBLANE)
    tile_m = _round_up(max(int(tile_m), SUBLANE), SUBLANE)   # guard static arg
    nsteps = _cdiv(b_p8, tile_m)
    if nsteps == 1 and b_p8 >= 2 * _MIN_SPLIT_ROWS:
        nsteps = 2                       # give the 2nd v7x TensorCore work
    tm = _round_up(_cdiv(b_p8, nsteps), SUBLANE)

    # Shrink the batch tile if the double-buffered x/out tiles do not fit in
    # VMEM next to the resident weights.
    def _tile_bytes(t):
        return 2 * t * (d_in_p * 4 + d_out_p * out_itemsize)
    while tm > SUBLANE and weight_bytes + _tile_bytes(tm) > budget:
        tm = max(SUBLANE, _round_up(tm // 2, SUBLANE))
    nsteps = _cdiv(b_p8, tm)
    tm = _round_up(_cdiv(b_p8, nsteps), SUBLANE)   # re-balance -> minimal padding
    b_p = tm * nsteps

    # x stays f32 (cast to bf16 happens inside the kernel); only pad here.
    x_p = _pad2d(x.astype(jnp.float32), b_p, d_in_p)

    const = lambda i: (0, 0)   # weights/biases: same block every step -> resident
    buffered = (pl.Buffered(1)
                if (single_buffer_weights and hasattr(pl, "Buffered")) else None)

    def const_spec(shape):
        if buffered is not None:
            return pl.BlockSpec(shape, const, pipeline_mode=buffered)
        return pl.BlockSpec(shape, const)

    in_specs = [
        pl.BlockSpec((tm, d_in_p), lambda i: (i, 0)),   # x: pipelined over batch
        const_spec((d_in_p, h_p)),
        const_spec((1, h_p)),
        const_spec((h_p, h_p)),
        const_spec((1, h_p)),
        const_spec((h_p, d_out_p)),
        const_spec((1, d_out_p)),
    ]
    out_spec = pl.BlockSpec((tm, d_out_p), lambda i: (i, 0))

    flops = 2 * b_p * (d_in_p * h_p + h_p * h_p + h_p * d_out_p)
    bytes_accessed = (x_p.size * 4
                      + weight_bytes // wbuf
                      + b_p * d_out_p * out_itemsize)

    out = pl.pallas_call(
        feed_forward_kernel,
        out_shape=jax.ShapeDtypeStruct((b_p, d_out_p), out_dtype),
        grid=(nsteps,),
        in_specs=in_specs,
        out_specs=out_spec,
        compiler_params=pltpu.CompilerParams(
            dimension_semantics=("parallel",),   # shard batch over TCs (v7x)
            vmem_limit_bytes=budget,             # generation-aware cap
        ),
        cost_estimate=pl.CostEstimate(
            flops=flops, transcendentals=0, bytes_accessed=bytes_accessed),
    )(x_p, padded_params["w1"], padded_params["b1"],
      padded_params["w2"], padded_params["b2"],
      padded_params["w3"], padded_params["b3"])

    return out[:B, :d_out]


def init_params(key, d_in, hidden, d_out):
    ks = jax.random.split(key, 6)
    s1 = 1.0 / jnp.sqrt(d_in)
    s2 = 1.0 / jnp.sqrt(hidden)
    return {
        "w1": jax.random.uniform(ks[0], (d_in, hidden), jnp.float32, -s1, s1),
        "b1": jax.random.uniform(ks[1], (1, hidden), jnp.float32, -s1, s1),
        "w2": jax.random.uniform(ks[2], (hidden, hidden), jnp.float32, -s2, s2),
        "b2": jax.random.uniform(ks[3], (1, hidden), jnp.float32, -s2, s2),
        "w3": jax.random.uniform(ks[4], (hidden, d_out), jnp.float32, -s2, s2),
        "b3": jax.random.uniform(ks[5], (1, d_out), jnp.float32, -s2, s2),
    }


def reference_forward(x, p):
    # Pure-JAX mirror of the PyTorch FeedForwardNetwork forward loop (f32).
    h = jnp.maximum(x @ p["w1"] + p["b1"], 0.0)
    h = jnp.maximum(h @ p["w2"] + p["b2"], 0.0)
    return h @ p["w3"] + p["b3"]


if __name__ == "__main__":
    key = jax.random.PRNGKey(0)
    k_x, k_p = jax.random.split(key)

    B, D_in, H, D_out = 8, 32, 64, 16
    x = jax.random.normal(k_x, (B, D_in), dtype=jnp.float32)
    params = init_params(k_p, D_in, H, D_out)

    # One-time param preparation (pad + bf16 cast), then the fused forward.
    padded_params, d_out = prepare_params(params)
    try:
        out = feed_forward_network(x, padded_params, d_out=d_out)
    except Exception:
        # Fallback for JAX builds without single-buffer pipeline_mode support.
        out = feed_forward_network(x, padded_params, d_out=d_out,
                                   single_buffer_weights=False)
    jax.block_until_ready(out)

    ref = reference_forward(x, params)
    assert out.shape == (B, D_out)
    max_err = float(jnp.max(jnp.abs(out - ref)))
    # bf16 MXU operands with f32 accumulation -> looser tolerance than the f32
    # reference (precision contract is explicit: pass compute_dtype=jnp.float32
    # to prepare_params for full parity at lower throughput).
    assert jnp.allclose(out, ref, atol=5e-2, rtol=5e-2), f"max_err={max_err}"

    # TODO(synk): the debug/intermediate-capture path of FeedForwardNetwork
    # (self.debug -> intermediate_values list) is not represented in the fused
    # kernel; it would require writing every layer's activation back to HBM.
    print("KERNEL_OK")
</pallas_src>

<mosaic_0001>
module attributes {stable_mosaic.version = 11 : i64} {
  func.func @feed_forward_kernel(%arg0: i32, %arg1: memref<8x128xf32, #tpu.memory_space<vmem>>, %arg2: memref<128x128xbf16, #tpu.memory_space<vmem>>, %arg3: memref<1x128xf32, #tpu.memory_space<vmem>>, %arg4: memref<128x128xbf16, #tpu.memory_space<vmem>>, %arg5: memref<1x128xf32, #tpu.memory_space<vmem>>, %arg6: memref<128x128xbf16, #tpu.memory_space<vmem>>, %arg7: memref<1x128xf32, #tpu.memory_space<vmem>>, %arg8: memref<8x128xf32, #tpu.memory_space<vmem>>) attributes {dimension_semantics = [#tpu.dimension_semantics<parallel>], iteration_bounds = array<i64: 1>, scalar_prefetch = 0 : i64, scratch_operands = 0 : i64, tpu.core_type = #tpu.core_type<tc>, window_params = [{transform_indices = @transform_0, window_bounds = array<i64: 8, 128>}, {pipeline_mode = #tpu.pipeline_mode<synchronous>, transform_indices = @transform_1, window_bounds = array<i64: 128, 128>}, {pipeline_mode = #tpu.pipeline_mode<synchronous>, transform_indices = @transform_2, window_bounds = array<i64: 1, 128>}, {pipeline_mode = #tpu.pipeline_mode<synchronous>, transform_indices = @transform_3, window_bounds = array<i64: 128, 128>}, {pipeline_mode = #tpu.pipeline_mode<synchronous>, transform_indices = @transform_4, window_bounds = array<i64: 1, 128>}, {pipeline_mode = #tpu.pipeline_mode<synchronous>, transform_indices = @transform_5, window_bounds = array<i64: 128, 128>}, {pipeline_mode = #tpu.pipeline_mode<synchronous>, transform_indices = @transform_6, window_bounds = array<i64: 1, 128>}, {transform_indices = @transform_7, window_bounds = array<i64: 8, 128>}]} {
    %c0 = arith.constant 0 : index
    %c0_0 = arith.constant 0 : index
    %0 = vector.load %arg1[%c0, %c0_0] : memref<8x128xf32, #tpu.memory_space<vmem>>, vector<8x128xf32>
    %1 = arith.truncf %0 : vector<8x128xf32> to vector<8x128xbf16>
    %c0_1 = arith.constant 0 : index
    %c0_2 = arith.constant 0 : index
    %2 = vector.load %arg2[%c0_1, %c0_2] : memref<128x128xbf16, #tpu.memory_space<vmem>>, vector<128x128xbf16>
    %cst = arith.constant dense<0.000000e+00> : vector<8x128xf32>
    %3 = tpu.matmul %1, %2, %cst {dimension_numbers = #tpu.dot_dimension_numbers<[1], [0], [0], [1], [0, 0, 1, 1], [], []>} : vector<8x128xbf16>, vector<128x128xbf16>, vector<8x128xf32> -> vector<8x128xf32>
    %c0_3 = arith.constant 0 : index
    %c0_4 = arith.constant 0 : index
    %4 = vector.load %arg3[%c0_3, %c0_4] : memref<1x128xf32, #tpu.memory_space<vmem>>, vector<1x128xf32>
    %5 = vector.broadcast %4 : vector<1x128xf32> to vector<8x128xf32>
    %6 = arith.addf %3, %5 : vector<8x128xf32>
    %cst_5 = arith.constant 0.000000e+00 : f32
    %7 = vector.broadcast %cst_5 : f32 to vector<8x128xf32>
    %8 = arith.maximumf %6, %7 : vector<8x128xf32>
    %9 = arith.truncf %8 : vector<8x128xf32> to vector<8x128xbf16>
    %c0_6 = arith.constant 0 : index
    %c0_7 = arith.constant 0 : index
    %10 = vector.load %arg4[%c0_6, %c0_7] : memref<128x128xbf16, #tpu.memory_space<vmem>>, vector<128x128xbf16>
    %cst_8 = arith.constant dense<0.000000e+00> : vector<8x128xf32>
    %11 = tpu.matmul %9, %10, %cst_8 {dimension_numbers = #tpu.dot_dimension_numbers<[1], [0], [0], [1], [0, 0, 1, 1], [], []>} : vector<8x128xbf16>, vector<128x128xbf16>, vector<8x128xf32> -> vector<8x128xf32>
    %c0_9 = arith.constant 0 : index
    %c0_10 = arith.constant 0 : index
    %12 = vector.load %arg5[%c0_9, %c0_10] : memref<1x128xf32, #tpu.memory_space<vmem>>, vector<1x128xf32>
    %13 = vector.broadcast %12 : vector<1x128xf32> to vector<8x128xf32>
    %14 = arith.addf %11, %13 : vector<8x128xf32>
    %cst_11 = arith.constant 0.000000e+00 : f32
    %15 = vector.broadcast %cst_11 : f32 to vector<8x128xf32>
    %16 = arith.maximumf %14, %15 : vector<8x128xf32>
    %17 = arith.truncf %16 : vector<8x128xf32> to vector<8x128xbf16>
    %c0_12 = arith.constant 0 : index
    %c0_13 = arith.constant 0 : index
    %18 = vector.load %arg6[%c0_12, %c0_13] : memref<128x128xbf16, #tpu.memory_space<vmem>>, vector<128x128xbf16>
    %cst_14 = arith.constant dense<0.000000e+00> : vector<8x128xf32>
    %19 = tpu.matmul %17, %18, %cst_14 {dimension_numbers = #tpu.dot_dimension_numbers<[1], [0], [0], [1], [0, 0, 1, 1], [], []>} : vector<8x128xbf16>, vector<128x128xbf16>, vector<8x128xf32> -> vector<8x128xf32>
    %c0_15 = arith.constant 0 : index
    %c0_16 = arith.constant 0 : index
    %20 = vector.load %arg7[%c0_15, %c0_16] : memref<1x128xf32, #tpu.memory_space<vmem>>, vector<1x128xf32>
    %21 = vector.broadcast %20 : vector<1x128xf32> to vector<8x128xf32>
    %22 = arith.addf %19, %21 : vector<8x128xf32>
    %c0_17 = arith.constant 0 : index
    %c0_18 = arith.constant 0 : index
    %23 = vector.load %arg8[%c0_17, %c0_18] : memref<8x128xf32, #tpu.memory_space<vmem>>, vector<8x128xf32>
    tpu.vector_store %arg8[%c0_17, %c0_18], %22 {strides = array<i32>} : memref<8x128xf32, #tpu.memory_space<vmem>>, vector<8x128xf32>,
    return
  }
  func.func @transform_0(%arg0: i32) -> (i32, i32) {
    %c0_i32 = arith.constant 0 : i32
    %c0_i32_0 = arith.constant 0 : i32
    return %arg0, %c0_i32 : i32, i32
  }
  func.func @transform_1(%arg0: i32) -> (i32, i32) {
    %c0_i32 = arith.constant 0 : i32
    %c0_i32_0 = arith.constant 0 : i32
    %c0_i32_1 = arith.constant 0 : i32
    return %c0_i32, %c0_i32_0 : i32, i32
  }
  func.func @transform_2(%arg0: i32) -> (i32, i32) {
    %c0_i32 = arith.constant 0 : i32
    %c0_i32_0 = arith.constant 0 : i32
    %c0_i32_1 = arith.constant 0 : i32
    return %c0_i32, %c0_i32_0 : i32, i32
  }
  func.func @transform_3(%arg0: i32) -> (i32, i32) {
    %c0_i32 = arith.constant 0 : i32
    %c0_i32_0 = arith.constant 0 : i32
    %c0_i32_1 = arith.constant 0 : i32
    return %c0_i32, %c0_i32_0 : i32, i32
  }
  func.func @transform_4(%arg0: i32) -> (i32, i32) {
    %c0_i32 = arith.constant 0 : i32
    %c0_i32_0 = arith.constant 0 : i32
    %c0_i32_1 = arith.constant 0 : i32
    return %c0_i32, %c0_i32_0 : i32, i32
  }
  func.func @transform_5(%arg0: i32) -> (i32, i32) {
    %c0_i32 = arith.constant 0 : i32
    %c0_i32_0 = arith.constant 0 : i32
    %c0_i32_1 = arith.constant 0 : i32
    return %c0_i32, %c0_i32_0 : i32, i32
  }
  func.func @transform_6(%arg0: i32) -> (i32, i32) {
    %c0_i32 = arith.constant 0 : i32
    %c0_i32_0 = arith.constant 0 : i32
    %c0_i32_1 = arith.constant 0 : i32
    return %c0_i32, %c0_i32_0 : i32, i32
  }
  func.func @transform_7(%arg0: i32) -> (i32, i32) {
    %c0_i32 = arith.constant 0 : i32
    %c0_i32_0 = arith.constant 0 : i32
    return %arg0, %c0_i32 : i32, i32
  }
}

module attributes {stable_mosaic.version = 11 : i64} {
  func.func @feed_forward_kernel(%arg0: i32, %arg1: memref<8x128xf32, #tpu.memory_space<vmem>>, %arg2: memref<128x128xbf16, #tpu.memory_space<vmem>>, %arg3: memref<1x128xf32, #tpu.memory_space<vmem>>, %arg4: memref<128x128xbf16, #tpu.memory_space<vmem>>, %arg5: memref<1x128xf32, #tpu.memory_space<vmem>>, %arg6: memref<128x128xbf16, #tpu.memory_space<vmem>>, %arg7: memref<1x128xf32, #tpu.memory_space<vmem>>, %arg8: memref<8x128xf32, #tpu.memory_space<vmem>>) attributes {dimension_semantics = [#tpu.dimension_semantics<parallel>], iteration_bounds = array<i64: 1>, scalar_prefetch = 0 : i64, scratch_operands = 0 : i64, tpu.core_type = #tpu.core_type<tc>, window_params = [{transform_indices = @transform_0, window_bounds = array<i64: 8, 128>}, {pipeline_mode = #tpu.pipeline_mode<synchronous>, transform_indices = @transform_1, window_bounds = array<i64: 128, 128>}, {pipeline_mode = #tpu.pipeline_mode<synchronous>, transform_indices = @transform_2, window_bounds = array<i64: 1, 128>}, {pipeline_mode = #tpu.pipeline_mode<synchronous>, transform_indices = @transform_3, window_bounds = array<i64: 128, 128>}, {pipeline_mode = #tpu.pipeline_mode<synchronous>, transform_indices = @transform_4, window_bounds = array<i64: 1, 128>}, {pipeline_mode = #tpu.pipeline_mode<synchronous>, transform_indices = @transform_5, window_bounds = array<i64: 128, 128>}, {pipeline_mode = #tpu.pipeline_mode<synchronous>, transform_indices = @transform_6, window_bounds = array<i64: 1, 128>}, {transform_indices = @transform_7, window_bounds = array<i64: 8, 128>}]} {
    %c0 = arith.constant 0 : index
    %c0_0 = arith.constant 0 : index
    %0 = vector.load %arg1[%c0, %c0_0] : memref<8x128xf32, #tpu.memory_space<vmem>>, vector<8x128xf32>
    %1 = arith.truncf %0 : vector<8x128xf32> to vector<8x128xbf16>
    %c0_1 = arith.constant 0 : index
    %c0_2 = arith.constant 0 : index
    %2 = vector.load %arg2[%c0_1, %c0_2] : memref<128x128xbf16, #tpu.memory_space<vmem>>, vector<128x128xbf16>
    %cst = arith.constant dense<0.000000e+00> : vector<8x128xf32>
    %3 = tpu.matmul %1, %2, %cst {dimension_numbers = #tpu.dot_dimension_numbers<[1], [0], [0], [1], [0, 0, 1, 1], [], []>} : vector<8x128xbf16>, vector<128x128xbf16>, vector<8x128xf32> -> vector<8x128xf32>
    %c0_3 = arith.constant 0 : index
    %c0_4 = arith.constant 0 : index
    %4 = vector.load %arg3[%c0_3, %c0_4] : memref<1x128xf32, #tpu.memory_space<vmem>>, vector<1x128xf32>
    %5 = vector.broadcast %4 : vector<1x128xf32> to vector<8x128xf32>
    %6 = arith.addf %3, %5 : vector<8x128xf32>
    %cst_5 = arith.constant 0.000000e+00 : f32
    %7 = vector.broadcast %cst_5 : f32 to vector<8x128xf32>
    %8 = arith.maximumf %6, %7 : vector<8x128xf32>
    %9 = arith.truncf %8 : vector<8x128xf32> to vector<8x128xbf16>
    %c0_6 = arith.constant 0 : index
    %c0_7 = arith.constant 0 : index
    %10 = vector.load %arg4[%c0_6, %c0_7] : memref<128x128xbf16, #tpu.memory_space<vmem>>, vector<128x128xbf16>
    %cst_8 = arith.constant dense<0.000000e+00> : vector<8x128xf32>
    %11 = tpu.matmul %9, %10, %cst_8 {dimension_numbers = #tpu.dot_dimension_numbers<[1], [0], [0], [1], [0, 0, 1, 1], [], []>} : vector<8x128xbf16>, vector<128x128xbf16>, vector<8x128xf32> -> vector<8x128xf32>
    %c0_9 = arith.constant 0 : index
    %c0_10 = arith.constant 0 : index
    %12 = vector.load %arg5[%c0_9, %c0_10] : memref<1x128xf32, #tpu.memory_space<vmem>>, vector<1x128xf32>
    %13 = vector.broadcast %12 : vector<1x128xf32> to vector<8x128xf32>
    %14 = arith.addf %11, %13 : vector<8x128xf32>
    %cst_11 = arith.constant 0.000000e+00 : f32
    %15 = vector.broadcast %cst_11 : f32 to vector<8x128xf32>
    %16 = arith.maximumf %14, %15 : vector<8x128xf32>
    %17 = arith.truncf %16 : vector<8x128xf32> to vector<8x128xbf16>
    %c0_12 = arith.constant 0 : index
    %c0_13 = arith.constant 0 : index
    %18 = vector.load %arg6[%c0_12, %c0_13] : memref<128x128xbf16, #tpu.memory_space<vmem>>, vector<128x128xbf16>
    %cst_14 = arith.constant dense<0.000000e+00> : vector<8x128xf32>
    %19 = tpu.matmul %17, %18, %cst_14 {dimension_numbers = #tpu.dot_dimension_numbers<[1], [0], [0], [1], [0, 0, 1, 1], [], []>} : vector<8x128xbf16>, vector<128x128xbf16>, vector<8x128xf32> -> vector<8x128xf32>
    %c0_15 = arith.constant 0 : index
    %c0_16 = arith.constant 0 : index
    %20 = vector.load %arg7[%c0_15, %c0_16] : memref<1x128xf32, #tpu.memory_space<vmem>>, vector<1x128xf32>
    %21 = vector.broadcast %20 : vector<1x128xf32> to vector<8x128xf32>
    %22 = arith.addf %19, %21 : vector<8x128xf32>
    %c0_17 = arith.constant 0 : index
    %c0_18 = arith.constant 0 : index
    %23 = vector.load %arg8[%c0_17, %c0_18] : memref<8x128xf32, #tpu.memory_space<vmem>>, vector<8x128xf32>
    tpu.vector_store %arg8[%c0_17, %c0_18], %22 {strides = array<i32>} : memref<8x128xf32, #tpu.memory_space<vmem>>, vector<8x128xf32>,
    return
  }
  func.func @transform_0(%arg0: i32) -> (i32, i32) {
    %c0_i32 = arith.constant 0 : i32
    %c0_i32_0 = arith.constant 0 : i32
    return %arg0, %c0_i32 : i32, i32
  }
  func.func @transform_1(%arg0: i32) -> (i32, i32) {
    %c0_i32 = arith.constant 0 : i32
    %c0_i32_0 = arith.constant 0 : i32
    %c0_i32_1 = arith.constant 0 : i32
    return %c0_i32, %c0_i32_0 : i32, i32
  }
  func.func @transform_2(%arg0: i32) -> (i32, i32) {
    %c0_i32 = arith.constant 0 : i32
    %c0_i32_0 = arith.constant 0 : i32
    %c0_i32_1 = arith.constant 0 : i32
    return %c0_i32, %c0_i32_0 : i32, i32
  }
  func.func @transform_3(%arg0: i32) -> (i32, i32) {
    %c0_i32 = arith.constant 0 : i32
    %c0_i32_0 = arith.constant 0 : i32
    %c0_i32_1 = arith.constant 0 : i32
    return %c0_i32, %c0_i32_0 : i32, i32
  }
  func.func @transform_4(%arg0: i32) -> (i32, i32) {
    %c0_i32 = arith.constant 0 : i32
    %c0_i32_0 = arith.constant 0 : i32
    %c0_i32_1 = arith.constant 0 : i32
    return %c0_i32, %c0_i32_0 : i32, i32
  }
  func.func @transform_5(%arg0: i32) -> (i32, i32) {
    %c0_i32 = arith.constant 0 : i32
    %c0_i32_0 = arith.constant 0 : i32
    %c0_i32_1 = arith.constant 0 : i32
    return %c0_i32, %c0_i32_0 : i32, i32
  }
  func.func @transform_6(%arg0: i32) -> (i32, i32) {
    %c0_i32 = arith.constant 0 : i32
    %c0_i32_0 = arith.constant 0 : i32
    %c0_i32_1 = arith.constant 0 : i32
    return %c0_i32, %c0_i32_0 : i32, i32
  }
  func.func @transform_7(%arg0: i32) -> (i32, i32) {
    %c0_i32 = arith.constant 0 : i32
    %c0_i32_0 = arith.constant 0 : i32
    return %arg0, %c0_i32 : i32, i32
  }
}

</mosaic_0001>

<bundles_post_ra>
// kernel: feed_forward_network.1
= control target key start
LH: loop header
LB: loop body
LE: loop exit
PB: predicated region body
PF: predicated region fallthrough
CT: control target
= control target key end

     0   :  { %12 = vsyncpa [#allocation3], 0  ;;  %s643_s0 = inlined_call_operand.vmem [shape: f32[8,128], index: 0, kind: input, shape index: {}]   ;;  %s644_s1 = inlined_call_operand.hbm [shape: bf16[128,128], index: 1, kind: input, shape index: {}]   ;;  %s645_s2 = inlined_call_operand.vmem [shape: f32[1,128], index: 2, kind: input, shape index: {}]   ;;  %s646_s3 = inlined_call_operand.hbm [shape: bf16[128,128], index: 3, kind: input, shape index: {}]   ;;  %s647_s4 = inlined_call_operand.vmem [shape: f32[1,128], index: 4, kind: input, shape index: {}]   ;;  %s648_s5 = inlined_call_operand.hbm [shape: bf16[128,128], index: 5, kind: input, shape index: {}]   ;;  %s649_s6 = inlined_call_operand.vmem [shape: f32[1,128], index: 6, kind: input, shape index: {}]   ;;  %s650_s7 = inlined_call_operand.hbm [shape: f32[8,128], index: 7, kind: output, shape index: {}]  }
   0x1   :  { %13 = vsyncpa [#allocation6], 0 }
   0x2   :  { %14 = vsyncpa [#allocation4], 0  ;;  %s36_s26 = sshll.u32 %s646_s3, 4  ;;  %s573_s27 = smov [#allocation5]   ;;  %s37_s26 = int_to_ptr.hbm [resolvable:$true] %s36_s26 }
   0x3   :  { %s38_s28 = sshll.u32 %s573_s27, 4  ;;  %s21_s8 = sshll.u32 %s644_s1, 4  ;;  %s39_s28 = int_to_ptr.vmem [resolvable:$true] %s38_s28  ;;  %s22_s8 = int_to_ptr.hbm [resolvable:$true] %s21_s8 }
   0x4   :  { %s574_s9 = smov 64   ;;  %s575_s10 = smov 4  }
   0x5   :  { %44 = dma.hbm_to_vmem [thread:$0]  %s37_s26, 1024, %s39_s28, [#allocation6], %s574_s9, %s574_s9, %s575_s10  }
   0x6   :  { %s576_s11 = smov [#allocation2]   ;;  %s51_s15 = sshll.u32 %s648_s5, 4  ;;  %s52_s15 = int_to_ptr.hbm [resolvable:$true] %s51_s15 }
   0x7   :  { %s23_s12 = sshll.u32 %s576_s11, 4  ;;  %s577_s3 = smov [#allocation7]   ;;  %s24_s12 = int_to_ptr.vmem [resolvable:$true] %s23_s12 }
   0x8   :  { %29 = dma.hbm_to_vmem [thread:$0]  %s22_s8, 1024, %s24_s12, [#allocation3], %s574_s9, %s574_s9, %s575_s10  }
   0x9   :  { %s53_s16 = sshll.u32 %s577_s3, 4  ;;  %s54_s16 = int_to_ptr.vmem [resolvable:$true] %s53_s16 }
   0xa   :  { %59 = dma.hbm_to_vmem [thread:$0]  %s52_s15, 1024, %s54_s16, [#allocation6], %s574_s9, %s574_s9, %s575_s10  }
   0xb   :  { %567 = dma.done.wait [#allocation3], 1024  }
   0xc   :  { %568 = vsyncadd [#allocation3], 4294966272 }
   0xd   :  { %569 = dma.done.wait [#allocation6], 2048  }
   0xe   :  { %570 = vsyncadd [#allocation6], 4294965248  ;;  %v445_v0 = vld [vmem:[#allocation2 + $0x38] sm:$0xff]  ;;  %v444_v1 = vld [vmem:[#allocation2 + $0x30] sm:$0xff]  ;;  %s578_s21 = smov [#allocation8]   ;;  %s331_s25 = sshll.u32 %s650_s7, 4  ;;  %s332_s25 = int_to_ptr.hbm [resolvable:$true] %s331_s25 }
   0xf   :  { %144 = vmatpush.bf16.msra.mxu0 %v445_v0  ;;  %v453_v2 = vld [vmem:[#allocation5 + $0x38] sm:$0xff]  ;;  %v452_v3 = vld [vmem:[#allocation5 + $0x30] sm:$0xff]  ;;  %v443_v4 = vld [vmem:[#allocation2 + $0x28] sm:$0xff]  ;;  %s329_s22 = sshll.u32 %s578_s21, 4  ;;  %s330_s22 = int_to_ptr.vmem [resolvable:$true] %s329_s22 }
  0x10   :  { %227 = vmatpush.bf16.msra.mxu1 %v453_v2  ;;  %v451_v5 = vld [vmem:[#allocation5 + $0x28] sm:$0xff]  ;;  %v442_v6 = vld [vmem:[#allocation2 + $0x20] sm:$0xff]  ;;  %v441_v8 = vld [vmem:[#allocation2 + $0x18] sm:$0xff] }
  0x11   :  { %v450_v7 = vld [vmem:[#allocation5 + $0x20] sm:$0xff]  ;;  %v449_v9 = vld [vmem:[#allocation5 + $0x18] sm:$0xff]  ;;  %v440_v10 = vld [vmem:[#allocation2 + $0x10] sm:$0xff] }
  0x12   :  { %v448_v11 = vld [vmem:[#allocation5 + $0x10] sm:$0xff]  ;;  %v439_v12 = vld [vmem:[#allocation2 + $0x8] sm:$0xff]  ;;  %v438_v13 = vld [vmem:[#allocation2] sm:$0xff] }
  0x13   :  { %145 = vmatpush.bf16.msra.mxu0 %v444_v1  ;;  %v74_v14 = vld [vmem:[%s643_s0] sm:$0xff]  ;;  %v447_v16 = vld [vmem:[#allocation5 + $0x8] sm:$0xff]  ;;  %v461_v18 = vld [vmem:[#allocation7 + $0x38] sm:$0xff] }
  0x14   :  { %228 = vmatpush.bf16.msra.mxu1 %v452_v3  ;;  %v75_v15 = vpack.c.bf16 %v74_v14, %v74_v14  ;;  %v446_v17 = vld [vmem:[#allocation5] sm:$0xff]  ;;  %310 = vmatpush.bf16.msra.mxu2 %v461_v18  ;;  %v460_v19 = vld [vmem:[#allocation7 + $0x30] sm:$0xff]  ;;  %v459_v20 = vld [vmem:[#allocation7 + $0x28] sm:$0xff] }
  0x15   :  { %v458_v21 = vld [vmem:[#allocation7 + $0x20] sm:$0xff]  ;;  %v457_v22 = vld [vmem:[#allocation7 + $0x18] sm:$0xff]  ;;  %v456_v23 = vld [vmem:[#allocation7 + $0x10] sm:$0xff] }
  0x16   :  { %v468_v24 = vld [vmem:[%s645_s2] ss:$0 sm:$0xff]  ;;  %v455_v30 = vld [vmem:[#allocation7 + $0x8] sm:$0xff] }
  0x17   :  { %146 = vmatpush.bf16.msra.mxu0 %v443_v4  ;;  %v454_v31 = vld [vmem:[#allocation7] sm:$0xff] }
  0x18   :  { %229 = vmatpush.bf16.msra.mxu1 %v451_v5  ;;  %311 = vmatpush.bf16.msra.mxu2 %v460_v19  ;;  %v469_v32 = vld [vmem:[%s647_s4] ss:$0 sm:$0xff] }
  0x19   :  { %v470_v38 = vld [vmem:[%s649_s6] ss:$0 sm:$0xff] }
  0x1b   :  { %147 = vmatpush.bf16.msra.mxu0 %v442_v6 }
  0x1c   :  { %230 = vmatpush.bf16.msra.mxu1 %v450_v7  ;;  %312 = vmatpush.bf16.msra.mxu2 %v459_v20 }
  0x1f   :  { %148 = vmatpush.bf16.msra.mxu0 %v441_v8 }
  0x20   :  { %231 = vmatpush.bf16.msra.mxu1 %v449_v9  ;;  %313 = vmatpush.bf16.msra.mxu2 %v458_v21 }
  0x23   :  { %149 = vmatpush.bf16.msra.mxu0 %v440_v10 }
  0x24   :  { %232 = vmatpush.bf16.msra.mxu1 %v448_v11  ;;  %314 = vmatpush.bf16.msra.mxu2 %v457_v22 }
  0x27   :  { %150 = vmatpush.bf16.msra.mxu0 %v439_v12 }
  0x28   :  { %233 = vmatpush.bf16.msra.mxu1 %v447_v16  ;;  %315 = vmatpush.bf16.msra.mxu2 %v456_v23 }
  0x2b   :  { %151 = vmatpush.bf16.msra.mxu0 %v438_v13 }
  0x2c   :  { %234 = vmatpush.bf16.msra.mxu1 %v446_v17  ;;  %316 = vmatpush.bf16.msra.mxu2 %v455_v30 }
  0x2e   :  { %152 = vmatmul.bf16.vlgmr.msra.gmra.mxu0 %v75_v15 }
  0x30   :  { %317 = vmatpush.bf16.msra.mxu2 %v454_v31 }
  0xab   :  { %v153_v25 = vpop.f32.mrf.mxu0 }
  0xac   :  { %v154_v26 = vadd.f32 %v468_v24, %v153_v25 }
  0xae   :  { %v157_v27 = vmax.f32 %v154_v26, 0.0 }
  0xb0   :  { %v158_v28 = vpack.c.bf16 %v157_v27, %v157_v27 }
  0xb2   :  { %235 = vmatmul.bf16.vlgmr.msra.gmra.mxu1 %v158_v28 }
  0xb3   :  { %v155_v29 = vpop.f32.mrf.mxu0 }
 0x12f   :  { %v236_v33 = vpop.f32.mrf.mxu1 }
 0x130   :  { %v237_v34 = vadd.f32 %v469_v32, %v236_v33 }
 0x132   :  { %v240_v35 = vmax.f32 %v237_v34, 0.0 }
 0x134   :  { %v241_v36 = vpack.c.bf16 %v240_v35, %v240_v35 }
 0x136   :  { %318 = vmatmul.bf16.vlgmr.msra.gmra.mxu2 %v241_v36 }
 0x137   :  { %v238_v37 = vpop.f32.mrf.mxu1 }
 0x1b9   :  { %v319_v39 = vpop.f32.mrf.mxu2 }
 0x1ba   :  { %v320_v40 = vadd.f32 %v470_v38, %v319_v39 }
 0x1bc   :  { %323 = vst [vmem:[#allocation8] sm:$0xff] %v320_v40 }
 0x1bd   :  { %334 = dma.vmem_to_hbm [thread:$0]  %s330_s22, 128, %s332_s25, [#allocation4]  }
 0x1c1   :  { %v321_v41 = vpop.f32.mrf.mxu2 }
 0x1c2   :  { %571 = dma.done.wait [#allocation4], 128  }
 0x1c3   :  { %572 = vsyncadd [#allocation4], 4294967168 }
 0x1c4   :  { %339 = vsyncpa [#allocation3], 1 }
 0x1c5   :  { %340 = vsyncpa [#allocation6], 1 }
 0x1c6   :  { %341 = vsyncpa [#allocation4], 1 }

// kernel: feed_forward_network.1
= control target key start
LH: loop header
LB: loop body
LE: loop exit
PB: predicated region body
PF: predicated region fallthrough
CT: control target
= control target key end

     0   :  { %12 = vsyncpa [#allocation3], 0  ;;  %s643_s0 = inlined_call_operand.vmem [shape: f32[8,128], index: 0, kind: input, shape index: {}]   ;;  %s644_s1 = inlined_call_operand.hbm [shape: bf16[128,128], index: 1, kind: input, shape index: {}]   ;;  %s645_s2 = inlined_call_operand.vmem [shape: f32[1,128], index: 2, kind: input, shape index: {}]   ;;  %s646_s3 = inlined_call_operand.hbm [shape: bf16[128,128], index: 3, kind: input, shape index: {}]   ;;  %s647_s4 = inlined_call_operand.vmem [shape: f32[1,128], index: 4, kind: input, shape index: {}]   ;;  %s648_s5 = inlined_call_operand.hbm [shape: bf16[128,128], index: 5, kind: input, shape index: {}]   ;;  %s649_s6 = inlined_call_operand.vmem [shape: f32[1,128], index: 6, kind: input, shape index: {}]   ;;  %s650_s7 = inlined_call_operand.hbm [shape: f32[8,128], index: 7, kind: output, shape index: {}]  }
   0x1   :  { %13 = vsyncpa [#allocation6], 0 }
   0x2   :  { %14 = vsyncpa [#allocation4], 0  ;;  %s36_s26 = sshll.u32 %s646_s3, 4  ;;  %s573_s27 = smov [#allocation5]   ;;  %s37_s26 = int_to_ptr.hbm [resolvable:$true] %s36_s26 }
   0x3   :  { %s38_s28 = sshll.u32 %s573_s27, 4  ;;  %s21_s8 = sshll.u32 %s644_s1, 4  ;;  %s39_s28 = int_to_ptr.vmem [resolvable:$true] %s38_s28  ;;  %s22_s8 = int_to_ptr.hbm [resolvable:$true] %s21_s8 }
   0x4   :  { %s574_s9 = smov 64   ;;  %s575_s10 = smov 4  }
   0x5   :  { %44 = dma.hbm_to_vmem [thread:$0]  %s37_s26, 1024, %s39_s28, [#allocation6], %s574_s9, %s574_s9, %s575_s10  }
   0x6   :  { %s576_s11 = smov [#allocation2]   ;;  %s51_s15 = sshll.u32 %s648_s5, 4  ;;  %s52_s15 = int_to_ptr.hbm [resolvable:$true] %s51_s15 }
   0x7   :  { %s23_s12 = sshll.u32 %s576_s11, 4  ;;  %s577_s3 = smov [#allocation7]   ;;  %s24_s12 = int_to_ptr.vmem [resolvable:$true] %s23_s12 }
   0x8   :  { %29 = dma.hbm_to_vmem [thread:$0]  %s22_s8, 1024, %s24_s12, [#allocation3], %s574_s9, %s574_s9, %s575_s10  }
   0x9   :  { %s53_s16 = sshll.u32 %s577_s3, 4  ;;  %s54_s16 = int_to_ptr.vmem [resolvable:$true] %s53_s16 }
   0xa   :  { %59 = dma.hbm_to_vmem [thread:$0]  %s52_s15, 1024, %s54_s16, [#allocation6], %s574_s9, %s574_s9, %s575_s10  }
   0xb   :  { %567 = dma.done.wait [#allocation3], 1024  }
   0xc   :  { %568 = vsyncadd [#allocation3], 4294966272 }
   0xd   :  { %569 = dma.done.wait [#allocation6], 2048  }
   0xe   :  { %570 = vsyncadd [#allocation6], 4294965248  ;;  %v445_v0 = vld [vmem:[#allocation2 + $0x38] sm:$0xff]  ;;  %v444_v1 = vld [vmem:[#allocation2 + $0x30] sm:$0xff]  ;;  %s578_s21 = smov [#allocation8]   ;;  %s331_s25 = sshll.u32 %s650_s7, 4  ;;  %s332_s25 = int_to_ptr.hbm [resolvable:$true] %s331_s25 }
   0xf   :  { %144 = vmatpush.bf16.msra.mxu0 %v445_v0  ;;  %v453_v2 = vld [vmem:[#allocation5 + $0x38] sm:$0xff]  ;;  %v452_v3 = vld [vmem:[#allocation5 + $0x30] sm:$0xff]  ;;  %v443_v4 = vld [vmem:[#allocation2 + $0x28] sm:$0xff]  ;;  %s329_s22 = sshll.u32 %s578_s21, 4  ;;  %s330_s22 = int_to_ptr.vmem [resolvable:$true] %s329_s22 }
  0x10   :  { %227 = vmatpush.bf16.msra.mxu1 %v453_v2  ;;  %v451_v5 = vld [vmem:[#allocation5 + $0x28] sm:$0xff]  ;;  %v442_v6 = vld [vmem:[#allocation2 + $0x20] sm:$0xff]  ;;  %v441_v8 = vld [vmem:[#allocation2 + $0x18] sm:$0xff] }
  0x11   :  { %v450_v7 = vld [vmem:[#allocation5 + $0x20] sm:$0xff]  ;;  %v449_v9 = vld [vmem:[#allocation5 + $0x18] sm:$0xff]  ;;  %v440_v10 = vld [vmem:[#allocation2 + $0x10] sm:$0xff] }
  0x12   :  { %v448_v11 = vld [vmem:[#allocation5 + $0x10] sm:$0xff]  ;;  %v439_v12 = vld [vmem:[#allocation2 + $0x8] sm:$0xff]  ;;  %v438_v13 = vld [vmem:[#allocation2] sm:$0xff] }
  0x13   :  { %145 = vmatpush.bf16.msra.mxu0 %v444_v1  ;;  %v74_v14 = vld [vmem:[%s643_s0] sm:$0xff]  ;;  %v447_v16 = vld [vmem:[#allocation5 + $0x8] sm:$0xff]  ;;  %v461_v18 = vld [vmem:[#allocation7 + $0x38] sm:$0xff] }
  0x14   :  { %228 = vmatpush.bf16.msra.mxu1 %v452_v3  ;;  %v75_v15 = vpack.c.bf16 %v74_v14, %v74_v14  ;;  %v446_v17 = vld [vmem:[#allocation5] sm:$0xff]  ;;  %310 = vmatpush.bf16.msra.mxu2 %v461_v18  ;;  %v460_v19 = vld [vmem:[#allocation7 + $0x30] sm:$0xff]  ;;  %v459_v20 = vld [vmem:[#allocation7 + $0x28] sm:$0xff] }
  0x15   :  { %v458_v21 = vld [vmem:[#allocation7 + $0x20] sm:$0xff]  ;;  %v457_v22 = vld [vmem:[#allocation7 + $0x18] sm:$0xff]  ;;  %v456_v23 = vld [vmem:[#allocation7 + $0x10] sm:$0xff] }
  0x16   :  { %v468_v24 = vld [vmem:[%s645_s2] ss:$0 sm:$0xff]  ;;  %v455_v30 = vld [vmem:[#allocation7 + $0x8] sm:$0xff] }
  0x17   :  { %146 = vmatpush.bf16.msra.mxu0 %v443_v4  ;;  %v454_v31 = vld [vmem:[#allocation7] sm:$0xff] }
  0x18   :  { %229 = vmatpush.bf16.msra.mxu1 %v451_v5  ;;  %311 = vmatpush.bf16.msra.mxu2 %v460_v19  ;;  %v469_v32 = vld [vmem:[%s647_s4] ss:$0 sm:$0xff] }
  0x19   :  { %v470_v38 = vld [vmem:[%s649_s6] ss:$0 sm:$0xff] }
  0x1b   :  { %147 = vmatpush.bf16.msra.mxu0 %v442_v6 }
  0x1c   :  { %230 = vmatpush.bf16.msra.mxu1 %v450_v7  ;;  %312 = vmatpush.bf16.msra.mxu2 %v459_v20 }
  0x1f   :  { %148 = vmatpush.bf16.msra.mxu0 %v441_v8 }
  0x20   :  { %231 = vmatpush.bf16.msra.mxu1 %v449_v9  ;;  %313 = vmatpush.bf16.msra.mxu2 %v458_v21 }
  0x23   :  { %149 = vmatpush.bf16.msra.mxu0 %v440_v10 }
  0x24   :  { %232 = vmatpush.bf16.msra.mxu1 %v448_v11  ;;  %314 = vmatpush.bf16.msra.mxu2 %v457_v22 }
  0x27   :  { %150 = vmatpush.bf16.msra.mxu0 %v439_v12 }
  0x28   :  { %233 = vmatpush.bf16.msra.mxu1 %v447_v16  ;;  %315 = vmatpush.bf16.msra.mxu2 %v456_v23 }
  0x2b   :  { %151 = vmatpush.bf16.msra.mxu0 %v438_v13 }
  0x2c   :  { %234 = vmatpush.bf16.msra.mxu1 %v446_v17  ;;  %316 = vmatpush.bf16.msra.mxu2 %v455_v30 }
  0x2e   :  { %152 = vmatmul.bf16.vlgmr.msra.gmra.mxu0 %v75_v15 }
  0x30   :  { %317 = vmatpush.bf16.msra.mxu2 %v454_v31 }
  0xab   :  { %v153_v25 = vpop.f32.mrf.mxu0 }
  0xac   :  { %v154_v26 = vadd.f32 %v468_v24, %v153_v25 }
  0xae   :  { %v157_v27 = vmax.f32 %v154_v26, 0.0 }
  0xb0   :  { %v158_v28 = vpack.c.bf16 %v157_v27, %v157_v27 }
  0xb2   :  { %235 = vmatmul.bf16.vlgmr.msra.gmra.mxu1 %v158_v28 }
  0xb3   :  { %v155_v29 = vpop.f32.mrf.mxu0 }
 0x12f   :  { %v236_v33 = vpop.f32.mrf.mxu1 }
 0x130   :  { %v237_v34 = vadd.f32 %v469_v32, %v236_v33 }
 0x132   :  { %v240_v35 = vmax.f32 %v237_v34, 0.0 }
 0x134   :  { %v241_v36 = vpack.c.bf16 %v240_v35, %v240_v35 }
 0x136   :  { %318 = vmatmul.bf16.vlgmr.msra.gmra.mxu2 %v241_v36 }
 0x137   :  { %v238_v37 = vpop.f32.mrf.mxu1 }
 0x1b9   :  { %v319_v39 = vpop.f32.mrf.mxu2 }
 0x1ba   :  { %v320_v40 = vadd.f32 %v470_v38, %v319_v39 }
 0x1bc   :  { %323 = vst [vmem:[#allocation8] sm:$0xff] %v320_v40 }
 0x1bd   :  { %334 = dma.vmem_to_hbm [thread:$0]  %s330_s22, 128, %s332_s25, [#allocation4]  }
 0x1c1   :  { %v321_v41 = vpop.f32.mrf.mxu2 }
 0x1c2   :  { %571 = dma.done.wait [#allocation4], 128  }
 0x1c3   :  { %572 = vsyncadd [#allocation4], 4294967168 }
 0x1c4   :  { %339 = vsyncpa [#allocation3], 1 }
 0x1c5   :  { %340 = vsyncpa [#allocation6], 1 }
 0x1c6   :  { %341 = vsyncpa [#allocation4], 1 }

</bundles_post_ra>
